<compile_context>
chip_gen: v6e
topology: v6e:2x2x1
jax: 0.10.0
libtpu: 0.0.40
codegen_flags: <defaults>
</compile_context>

<pallas_src>
import functools

import numpy as np
import jax
import jax.numpy as jnp
from jax import lax
from jax.experimental import pallas as pl
from jax.experimental.pallas import tpu as pltpu


# ----------------------------------------------------------------------------- #
# Init-time constants (STFT bases, window), computed in numpy (deterministic).
# ----------------------------------------------------------------------------- #
def _round_up(x, m):
    return (x + m - 1) // m * m


def _periodic_hann(n):
    return 0.5 - 0.5 * np.cos(2.0 * np.pi * np.arange(n) / n)


def make_stft_bases(filter_length, hop_length, win_length):
    scale = filter_length / hop_length
    fourier_basis = np.fft.fft(np.eye(filter_length))
    cutoff = filter_length // 2 + 1
    fourier_basis = np.vstack([np.real(fourier_basis[:cutoff, :]),
                               np.imag(fourier_basis[:cutoff, :])])          # (2C, F)
    inverse_basis = np.linalg.pinv(scale * fourier_basis).T                   # (2C, F)

    fft_window = _periodic_hann(win_length)
    pad = filter_length - win_length
    fft_window = np.pad(fft_window, (pad // 2, pad - pad // 2))

    forward_basis = fourier_basis * fft_window[None, :]
    inverse_basis = inverse_basis * fft_window[None, :]

    real_fwd = np.ascontiguousarray(forward_basis[:cutoff, :].T).astype(np.float32)  # (F, C)
    imag_fwd = np.ascontiguousarray(forward_basis[cutoff:, :].T).astype(np.float32)  # (F, C)
    inv_real = np.ascontiguousarray(inverse_basis[:cutoff, :]).astype(np.float32)    # (C, F)
    inv_imag = np.ascontiguousarray(inverse_basis[cutoff:, :]).astype(np.float32)    # (C, F)
    return real_fwd, imag_fwd, inv_real, inv_imag, fft_window.astype(np.float32)


# ----------------------------------------------------------------------------- #
# Pallas kernel: fused forward STFT -> bias denoise -> inverse-basis projection.
# Operates on a (TILE_M, F_pad) tile of flattened frames; bases are full blocks.
# ----------------------------------------------------------------------------- #
def denoise_frames_kernel(frames_ref, fwd_ref, inv_ref, bias_ref, out_ref,
                          *, c_pad, tiny):
    x = frames_ref[...]                                                       # (TM, F_pad)
    # Single fused forward matmul: lanes [0:c_pad) = real part, [c_pad:) = imag.
    ri = jnp.dot(x, fwd_ref[...], preferred_element_type=jnp.float32)         # (TM, 2*C_pad)
    r = ri[:, :c_pad]
    im = ri[:, c_pad:]

    s = r * r + im * im
    inv_mag = lax.rsqrt(s + tiny)                                             # single EUP op
    # ratio == max(mag - bias, 0) / mag  (bias >= 0); mag==0 lanes -> rec == 0,
    # matching torch's atan2(0,0)==0 + clamp behavior for non-negative bias.
    ratio = jnp.maximum(1.0 - bias_ref[...] * inv_mag, 0.0)                   # (TM, C_pad)

    rec = ri * jnp.concatenate([ratio, ratio], axis=-1)                       # (TM, 2*C_pad)
    out_ref[...] = jnp.dot(rec, inv_ref[...], preferred_element_type=jnp.float32)


# ----------------------------------------------------------------------------- #
# Denoiser module (parameters + forward wrapper)
# ----------------------------------------------------------------------------- #
class DenoiserPallas:
    def __init__(self, filter_length=64, n_overlap=4, win_length=64, mode='zeros'):
        self.filter_length = int(filter_length)
        self.hop_length = int(filter_length / n_overlap)
        self.win_length = int(win_length)
        self.cutoff = self.filter_length // 2 + 1
        assert self.filter_length % self.hop_length == 0

        (real_fwd, imag_fwd, inv_real, inv_imag, fft_window) = make_stft_bases(
            self.filter_length, self.hop_length, self.win_length)
        self.fft_window = fft_window

        F, C = self.filter_length, self.cutoff
        self.F_pad = _round_up(F, 128)       # lane-dense frame / output axis
        self.C_pad = _round_up(C, 128)       # lane-dense spectrum axis

        # Fused + lane-padded forward basis (F_pad, 2*C_pad): real | imag.
        fwd_fused = np.zeros((self.F_pad, 2 * self.C_pad), np.float32)
        fwd_fused[:F, :C] = real_fwd
        fwd_fused[:F, self.C_pad:self.C_pad + C] = imag_fwd
        # Fused + padded inverse basis (2*C_pad, F_pad): [inv_real; inv_imag].
        inv_fused = np.zeros((2 * self.C_pad, self.F_pad), np.float32)
        inv_fused[:C, :F] = inv_real
        inv_fused[self.C_pad:self.C_pad + C, :F] = inv_imag
        self.fwd_fused = jnp.asarray(fwd_fused)
        self.inv_fused = jnp.asarray(inv_fused)

        # TODO(synk): waveglow.infer(mel_input, sigma=0.0) is not translated; the
        # bias audio is synthesized deterministically and its first STFT frame's
        # magnitude is used as bias_spec (same (cutoff,) shape/semantics).
        rng = np.random.default_rng(0)
        bias_audio = (0.01 * rng.standard_normal(4 * F)).astype(np.float32)
        padded = np.pad(bias_audio, (F // 2, F // 2), mode='reflect')
        frame0 = padded[:F]
        r0 = frame0 @ real_fwd
        i0 = frame0 @ imag_fwd
        self.bias_spec = np.sqrt(r0 * r0 + i0 * i0).astype(np.float32)        # (C,)

    def __call__(self, audio, strength=0.1, tile_m=256):
        # rsqrt-form ratio assumes non-negative scaled bias (strength >= 0).
        assert strength >= 0.0
        B, num_samples = audio.shape
        F, hop, C = self.filter_length, self.hop_length, self.cutoff
        overlap = F // hop
        F_pad, C_pad = self.F_pad, self.C_pad
        tiny = float(np.finfo(np.float32).tiny)

        # --- framing (reflect pad + shifted-slice concat, no gather) ---------- #
        padded = jnp.pad(audio.astype(jnp.float32),
                         ((0, 0), (F // 2, F // 2)), mode='reflect')
        pad_len = padded.shape[1]
        T = (pad_len - F) // hop + 1
        n_chunks = T + overlap - 1
        chunks = padded[:, :n_chunks * hop].reshape(B, n_chunks, hop)
        frames = jnp.concatenate([chunks[:, k:k + T, :] for k in range(overlap)],
                                 axis=-1)                                      # (B, T, F)

        # --- row-tiled, lane-padded layout for the kernel --------------------- #
        M = B * T
        TILE_M = min(int(tile_m), _round_up(M, 8))
        M_pad = _round_up(M, TILE_M)
        frames_flat = jnp.pad(frames.reshape(M, F),
                              ((0, M_pad - M), (0, F_pad - F)))                # (M_pad, F_pad)

        scaled_bias = jnp.zeros((1, C_pad), jnp.float32).at[0, :C].set(
            jnp.asarray(self.bias_spec) * strength)

        contrib = pl.pallas_call(
            functools.partial(denoise_frames_kernel, c_pad=C_pad, tiny=tiny),
            out_shape=jax.ShapeDtypeStruct((M_pad, F_pad), jnp.float32),
            grid=(M_pad // TILE_M,),
            in_specs=[
                pl.BlockSpec((TILE_M, F_pad), lambda i: (i, 0)),
                pl.BlockSpec((F_pad, 2 * C_pad), lambda i: (0, 0)),
                pl.BlockSpec((2 * C_pad, F_pad), lambda i: (0, 0)),
                pl.BlockSpec((1, C_pad), lambda i: (0, 0)),
            ],
            out_specs=pl.BlockSpec((TILE_M, F_pad), lambda i: (i, 0)),
            compiler_params=pltpu.CompilerParams(
                dimension_semantics=("parallel",)),
        )(frames_flat, self.fwd_fused, self.inv_fused, scaled_bias)

        contrib = contrib[:M, :F].reshape(B, T, overlap, hop)

        # --- overlap-add as `overlap` shifted adds (no scatter) --------------- #
        out_chunks = T + overlap - 1
        out_len = out_chunks * hop                                             # (T-1)*hop + F
        pieces = [jnp.pad(contrib[:, :, k, :],
                          ((0, 0), (k, overlap - 1 - k), (0, 0)))
                  for k in range(overlap)]
        y = sum(pieces).reshape(B, out_len)

        # --- window-sum-square correction + filter/hop rescale (one multiply) -- #
        win_sq = self.fft_window ** 2
        wsum = np.zeros(out_len, np.float32)
        for t in range(T):
            wsum[t * hop: t * hop + F] += win_sq
        scale = float(F) / float(hop)
        inv_w = np.where(wsum > tiny, scale / wsum, scale).astype(np.float32)
        y = y * jnp.asarray(inv_w)[None, :]

        # --- trim filter_length//2 from both ends, add channel dim ------------ #
        y = y[:, F // 2: out_len - F // 2]                                     # (B, (T-1)*hop)
        return y[:, None, :]                                                   # (B, 1, L)


# ----------------------------------------------------------------------------- #
if __name__ == "__main__":
    # small shapes: filter_length=64, n_overlap=4 (hop=16), win_length=64
    denoiser = DenoiserPallas(filter_length=64, n_overlap=4, win_length=64, mode='zeros')

    key = jax.random.PRNGKey(0)
    B, num_samples = 2, 256
    audio = 0.5 * jax.random.normal(key, (B, num_samples), dtype=jnp.float32)

    out = denoiser(audio, strength=0.1)
    out = jax.block_until_ready(out)
    assert out.shape == (B, 1, num_samples), out.shape
    assert jnp.all(jnp.isfinite(out))
    print("KERNEL_OK")
</pallas_src>

<mosaic_0001>
module attributes {stable_mosaic.version = 11 : i64} {
  func.func @denoise_frames_kernel(%arg0: i32, %arg1: memref<40x128xf32, #tpu.memory_space<vmem>>, %arg2: memref<128x256xf32, #tpu.memory_space<vmem>>, %arg3: memref<256x128xf32, #tpu.memory_space<vmem>>, %arg4: memref<1x128xf32, #tpu.memory_space<vmem>>, %arg5: memref<40x128xf32, #tpu.memory_space<vmem>>) attributes {dimension_semantics = [#tpu.dimension_semantics<parallel>], iteration_bounds = array<i64: 1>, scalar_prefetch = 0 : i64, scratch_operands = 0 : i64, tpu.core_type = #tpu.core_type<tc>, window_params = [{transform_indices = @transform_0, window_bounds = array<i64: 40, 128>}, {pipeline_mode = #tpu.pipeline_mode<synchronous>, transform_indices = @transform_1, window_bounds = array<i64: 128, 256>}, {pipeline_mode = #tpu.pipeline_mode<synchronous>, transform_indices = @transform_2, window_bounds = array<i64: 256, 128>}, {pipeline_mode = #tpu.pipeline_mode<synchronous>, transform_indices = @transform_3, window_bounds = array<i64: 1, 128>}, {transform_indices = @transform_4, window_bounds = array<i64: 40, 128>}]} {
    %c0 = arith.constant 0 : index
    %c0_0 = arith.constant 0 : index
    %0 = vector.load %arg1[%c0, %c0_0] : memref<40x128xf32, #tpu.memory_space<vmem>>, vector<40x128xf32>
    %c0_1 = arith.constant 0 : index
    %c0_2 = arith.constant 0 : index
    %1 = vector.load %arg2[%c0_1, %c0_2] : memref<128x256xf32, #tpu.memory_space<vmem>>, vector<128x256xf32>
    %cst = arith.constant dense<0.000000e+00> : vector<40x256xf32>
    %2 = tpu.matmul %0, %1, %cst {dimension_numbers = #tpu.dot_dimension_numbers<[1], [0], [0], [1], [0, 0, 1, 1], [], []>} : vector<40x128xf32>, vector<128x256xf32>, vector<40x256xf32> -> vector<40x256xf32>
    %3 = vector.extract_strided_slice %2 {offsets = [0, 0], sizes = [40, 128], strides = [1, 1]} : vector<40x256xf32> to vector<40x128xf32>
    %4 = vector.extract_strided_slice %2 {offsets = [0, 128], sizes = [40, 128], strides = [1, 1]} : vector<40x256xf32> to vector<40x128xf32>
    %5 = arith.mulf %3, %3 : vector<40x128xf32>
    %6 = arith.mulf %4, %4 : vector<40x128xf32>
    %7 = arith.addf %5, %6 : vector<40x128xf32>
    %cst_3 = arith.constant 1.17549435E-38 : f32
    %8 = vector.broadcast %cst_3 : f32 to vector<40x128xf32>
    %9 = arith.addf %7, %8 : vector<40x128xf32>
    %10 = math.rsqrt %9 : vector<40x128xf32>
    %c0_4 = arith.constant 0 : index
    %c0_5 = arith.constant 0 : index
    %11 = vector.load %arg4[%c0_4, %c0_5] : memref<1x128xf32, #tpu.memory_space<vmem>>, vector<1x128xf32>
    %12 = vector.broadcast %11 : vector<1x128xf32> to vector<40x128xf32>
    %13 = arith.mulf %12, %10 : vector<40x128xf32>
    %cst_6 = arith.constant 1.000000e+00 : f32
    %14 = vector.broadcast %cst_6 : f32 to vector<40x128xf32>
    %15 = arith.subf %14, %13 : vector<40x128xf32>
    %cst_7 = arith.constant 0.000000e+00 : f32
    %16 = vector.broadcast %cst_7 : f32 to vector<40x128xf32>
    %17 = arith.maximumf %15, %16 : vector<40x128xf32>
    %18 = tpu.concatenate %17, %17 in 1 : vector<40x128xf32>, vector<40x128xf32> -> vector<40x256xf32>
    %19 = arith.mulf %2, %18 : vector<40x256xf32>
    %c0_8 = arith.constant 0 : index
    %c0_9 = arith.constant 0 : index
    %20 = vector.load %arg3[%c0_8, %c0_9] : memref<256x128xf32, #tpu.memory_space<vmem>>, vector<256x128xf32>
    %cst_10 = arith.constant dense<0.000000e+00> : vector<40x128xf32>
    %21 = tpu.matmul %19, %20, %cst_10 {dimension_numbers = #tpu.dot_dimension_numbers<[1], [0], [0], [1], [0, 0, 1, 1], [], []>} : vector<40x256xf32>, vector<256x128xf32>, vector<40x128xf32> -> vector<40x128xf32>
    %c0_11 = arith.constant 0 : index
    %c0_12 = arith.constant 0 : index
    %22 = vector.load %arg5[%c0_11, %c0_12] : memref<40x128xf32, #tpu.memory_space<vmem>>, vector<40x128xf32>
    tpu.vector_store %arg5[%c0_11, %c0_12], %21 {strides = array<i32>} : memref<40x128xf32, #tpu.memory_space<vmem>>, vector<40x128xf32>,
    return
  }
  func.func @transform_0(%arg0: i32) -> (i32, i32) {
    %c0_i32 = arith.constant 0 : i32
    %c0_i32_0 = arith.constant 0 : i32
    return %arg0, %c0_i32 : i32, i32
  }
  func.func @transform_1(%arg0: i32) -> (i32, i32) {
    %c0_i32 = arith.constant 0 : i32
    %c0_i32_0 = arith.constant 0 : i32
    %c0_i32_1 = arith.constant 0 : i32
    return %c0_i32, %c0_i32_0 : i32, i32
  }
  func.func @transform_2(%arg0: i32) -> (i32, i32) {
    %c0_i32 = arith.constant 0 : i32
    %c0_i32_0 = arith.constant 0 : i32
    %c0_i32_1 = arith.constant 0 : i32
    return %c0_i32, %c0_i32_0 : i32, i32
  }
  func.func @transform_3(%arg0: i32) -> (i32, i32) {
    %c0_i32 = arith.constant 0 : i32
    %c0_i32_0 = arith.constant 0 : i32
    %c0_i32_1 = arith.constant 0 : i32
    return %c0_i32, %c0_i32_0 : i32, i32
  }
  func.func @transform_4(%arg0: i32) -> (i32, i32) {
    %c0_i32 = arith.constant 0 : i32
    %c0_i32_0 = arith.constant 0 : i32
    return %arg0, %c0_i32 : i32, i32
  }
}

</mosaic_0001>

<bundles_post_ra>
// kernel: tpu_custom_call.1
= control target key start
LH: loop header
LB: loop body
LE: loop exit
PB: predicated region body
PF: predicated region fallthrough
CT: control target
= control target key end

     0   :  { %9 = vsyncpa [#allocation3], 0  ;;  %s609_s0 = inlined_call_operand.hbm [shape: f32[40,128], index: 0, kind: input, shape index: {}]   ;;  %s610_s1 = inlined_call_operand.hbm [shape: f32[128,256], index: 1, kind: input, shape index: {}]   ;;  %s611_s2 = inlined_call_operand.hbm [shape: f32[256,128], index: 2, kind: input, shape index: {}]   ;;  %s612_s3 = inlined_call_operand.vmem [shape: f32[1,128], index: 3, kind: input, shape index: {}]   ;;  %s613_s4 = inlined_call_operand.hbm [shape: f32[40,128], index: 4, kind: output, shape index: {}]  }
   0x1   :  { %10 = vsyncpa [#allocation6], 0 }
   0x2   :  { %11 = vsyncpa [#allocation4], 0  ;;  %s546_s15 = smov [#allocation5]  }
   0x3   :  { %s29_s16 = sshll.u32 %s546_s15, 4  ;;  %s30_s16 = int_to_ptr.vmem [resolvable:$true] %s29_s16 }
   0x4   :  { %s468_s17 = scalar_lea.vmem %s30_s16, 4096  ;;  %p473_p1 = scmp.lt.s32.totalorder %s30_s16, %s30_s16 }
   0x5   :  { %p469_p0 = scmp.ne.s32.totalorder %s30_s16, %s468_s17  ;;  %p474_p2 = scmp.lt.s32.totalorder %s468_s17, %s468_s17 }
   0x7   :  { %p475_p3 = por %p474_p2, %p473_p1 }
   0x9   :  { %p476_p4 = pnand %p475_p3, %p469_p0 }
   0xb   :  { %479 = shalt.err (!%p476_p4)
}
   0xc   :  { %s547_s18 = smov 256   ;;  %s548_s19 = smov 16  }
   0xd   :  { %35 = dma.hbm_to_vmem [thread:$0]  %s610_s1, 4096, %s30_s16, [#allocation6], %s547_s18, %s547_s18, %s548_s19  }
   0xe   :  { %s549_s22 = smov [#allocation2]  }
   0xf   :  { %s17_s23 = sshll.u32 %s549_s22, 4  ;;  %s18_s23 = int_to_ptr.vmem [resolvable:$true] %s17_s23 }
  0x10   :  { %s488_s24 = scalar_lea.vmem %s18_s23, 640  ;;  %p493_p6 = scmp.lt.s32.totalorder %s18_s23, %s18_s23 }
  0x11   :  { %p489_p5 = scmp.ne.s32.totalorder %s18_s23, %s488_s24  ;;  %p494_p7 = scmp.lt.s32.totalorder %s488_s24, %s488_s24 }
  0x13   :  { %p495_p8 = por %p494_p7, %p493_p6 }
  0x15   :  { %p496_p9 = pnand %p495_p8, %p489_p5 }
  0x17   :  { %499 = shalt.err (!%p496_p9)
}
  0x18   :  { %s550_s25 = smov 128   ;;  %s551_s26 = smov 8  }
  0x19   :  { %23 = dma.hbm_to_vmem [thread:$0]  %s609_s0, 640, %s18_s23, [#allocation3], %s550_s25, %s550_s25, %s551_s26  }
  0x1a   :  { %s552_s1 = smov [#allocation7]  }
  0x1b   :  { %s41_s29 = sshll.u32 %s552_s1, 4  ;;  %s42_s29 = int_to_ptr.vmem [resolvable:$true] %s41_s29 }
  0x1c   :  { %s508_s30 = scalar_lea.vmem %s42_s29, 4096  ;;  %p513_p11 = scmp.lt.s32.totalorder %s42_s29, %s42_s29 }
  0x1d   :  { %p509_p10 = scmp.ne.s32.totalorder %s42_s29, %s508_s30  ;;  %p514_p12 = scmp.lt.s32.totalorder %s508_s30, %s508_s30 }
  0x1f   :  { %p515_p13 = por %p514_p12, %p513_p11 }
  0x21   :  { %p516_p0 = pnand %p515_p13, %p509_p10 }
  0x23   :  { %519 = shalt.err (!%p516_p0)
}
  0x24   :  { %47 = dma.hbm_to_vmem [thread:$0]  %s611_s2, 4096, %s42_s29, [#allocation6], %s550_s25, %s550_s25, %s551_s26  }
  0x25   :  { %540 = dma.done.wait [#allocation3], 640  }
  0x26   :  { %541 = vsyncadd [#allocation3], 4294966656 }
  0x27   :  { %542 = dma.done.wait [#allocation6], 8192  }
  0x28   :  { %543 = vsyncadd [#allocation6], 4294959104  ;;  %v553_v0 = vmov 0.0   ;;  %v95_v1 = vld [vmem:[#allocation5 + $0xf8] sm:$0xff]  ;;  %v94_v2 = vld [vmem:[#allocation5 + $0xf0] sm:$0xff] }
  0x29   :  { %160 = vmatprep.mubr.f32.mxu0 %v553_v0  ;;  %v93_v3 = vld [vmem:[#allocation5 + $0xe8] sm:$0xff]  ;;  %96 = vmatprep.subr.mxu0 %v95_v1  ;;  %v92_v4 = vld [vmem:[#allocation5 + $0xe0] sm:$0xff]  ;;  %v91_v5 = vld [vmem:[#allocation5 + $0xd8] sm:$0xff] }
  0x2a   :  { %97 = vmatpush1.msra.mxu0 %v94_v2  ;;  %v90_v6 = vld [vmem:[#allocation5 + $0xd0] sm:$0xff]  ;;  %v89_v7 = vld [vmem:[#allocation5 + $0xc8] sm:$0xff]  ;;  %v88_v8 = vld [vmem:[#allocation5 + $0xc0] sm:$0xff] }
  0x2b   :  { %98 = vmatprep.subr.mxu0 %v93_v3  ;;  %v87_v9 = vld [vmem:[#allocation5 + $0xb8] sm:$0xff]  ;;  %v86_v10 = vld [vmem:[#allocation5 + $0xb0] sm:$0xff]  ;;  %v85_v11 = vld [vmem:[#allocation5 + $0xa8] sm:$0xff] }
  0x2c   :  { %99 = vmatpush1.msra.mxu0 %v92_v4  ;;  %v84_v12 = vld [vmem:[#allocation5 + $0xa0] sm:$0xff]  ;;  %v83_v13 = vld [vmem:[#allocation5 + $0x98] sm:$0xff]  ;;  %v82_v14 = vld [vmem:[#allocation5 + $0x90] sm:$0xff] }
  0x2d   :  { %100 = vmatprep.subr.mxu0 %v91_v5  ;;  %v81_v15 = vld [vmem:[#allocation5 + $0x88] sm:$0xff]  ;;  %v80_v16 = vld [vmem:[#allocation5 + $0x80] sm:$0xff]  ;;  %v79_v17 = vld [vmem:[#allocation5 + $0x78] sm:$0xff] }
  0x2e   :  { %101 = vmatpush1.msra.mxu0 %v90_v6  ;;  %v78_v18 = vld [vmem:[#allocation5 + $0x70] sm:$0xff]  ;;  %v77_v19 = vld [vmem:[#allocation5 + $0x68] sm:$0xff]  ;;  %v76_v20 = vld [vmem:[#allocation5 + $0x60] sm:$0xff] }
  0x2f   :  { %102 = vmatprep.subr.mxu0 %v89_v7  ;;  %v75_v21 = vld [vmem:[#allocation5 + $0x58] sm:$0xff]  ;;  %v74_v22 = vld [vmem:[#allocation5 + $0x50] sm:$0xff]  ;;  %v73_v23 = vld [vmem:[#allocation5 + $0x48] sm:$0xff] }
  0x30   :  { %103 = vmatpush1.msra.mxu0 %v88_v8  ;;  %v72_v24 = vld [vmem:[#allocation5 + $0x40] sm:$0xff]  ;;  %v71_v25 = vld [vmem:[#allocation5 + $0x38] sm:$0xff]  ;;  %v70_v26 = vld [vmem:[#allocation5 + $0x30] sm:$0xff] }
  0x31   :  { %104 = vmatprep.subr.mxu0 %v87_v9  ;;  %v69_v27 = vld [vmem:[#allocation5 + $0x28] sm:$0xff]  ;;  %v68_v28 = vld [vmem:[#allocation5 + $0x20] sm:$0xff]  ;;  %v67_v29 = vld [vmem:[#allocation5 + $0x18] sm:$0xff] }
  0x32   :  { %105 = vmatpush1.msra.mxu0 %v86_v10  ;;  %v66_v30 = vld [vmem:[#allocation5 + $0x10] sm:$0xff]  ;;  %v65_v31 = vld [vmem:[#allocation5 + $0x8] sm:$0xff]  ;;  %v64_v32 = vld [vmem:[#allocation5] sm:$0xff] }
  0x33   :  { %106 = vmatprep.subr.mxu0 %v85_v11  ;;  %v59_v33 = vld [vmem:[#allocation2] sm:$0xff]  ;;  %v60_v34 = vld [vmem:[#allocation2 + $0x8] sm:$0xff]  ;;  %v61_v35 = vld [vmem:[#allocation2 + $0x10] sm:$0xff] }
  0x34   :  { %107 = vmatpush1.msra.mxu0 %v84_v12  ;;  %v62_v36 = vld [vmem:[#allocation2 + $0x18] sm:$0xff]  ;;  %v63_v37 = vld [vmem:[#allocation2 + $0x20] sm:$0xff]  ;;  %v277_v42 = vld [vmem:[#allocation7 + $0xe8] sm:$0xff] }
  0x35   :  { %108 = vmatprep.subr.mxu0 %v83_v13  ;;  %v279_v38 = vld [vmem:[#allocation7 + $0xf8] sm:$0xff]  ;;  %v278_v40 = vld [vmem:[#allocation7 + $0xf0] sm:$0xff]  ;;  %v261_v43 = vld [vmem:[#allocation7 + $0x68] sm:$0xff] }
  0x36   :  { %109 = vmatpush1.msra.mxu0 %v82_v14  ;;  %394 = vmatprep.subr.mxu1 %v279_v38  ;;  %v263_v39 = vld [vmem:[#allocation7 + $0x78] sm:$0xff]  ;;  %v262_v41 = vld [vmem:[#allocation7 + $0x70] sm:$0xff]  ;;  %v276_v44 = vld [vmem:[#allocation7 + $0xe0] sm:$0xff] }
  0x37   :  { %110 = vmatprep.subr.mxu0 %v81_v15  ;;  %395 = vmatpush3.msra.mxu1 %v263_v39  ;;  %v260_v45 = vld [vmem:[#allocation7 + $0x60] sm:$0xff]  ;;  %v275_v46 = vld [vmem:[#allocation7 + $0xd8] sm:$0xff]  ;;  %v274_v48 = vld [vmem:[#allocation7 + $0xd0] sm:$0xff] }
  0x38   :  { %111 = vmatpush1.msra.mxu0 %v80_v16  ;;  %396 = vmatprep.subr.mxu1 %v278_v40  ;;  %v259_v47 = vld [vmem:[#allocation7 + $0x58] sm:$0xff]  ;;  %v258_v49 = vld [vmem:[#allocation7 + $0x50] sm:$0xff]  ;;  %v273_v50 = vld [vmem:[#allocation7 + $0xc8] sm:$0xff] }
  0x39   :  { %112 = vmatprep.subr.mxu0 %v79_v17  ;;  %397 = vmatpush3.msra.mxu1 %v262_v41  ;;  %v257_v51 = vld [vmem:[#allocation7 + $0x48] sm:$0xff]  ;;  %v272_v52 = vld [vmem:[#allocation7 + $0xc0] sm:$0xff]  ;;  %v271_v54 = vld [vmem:[#allocation7 + $0xb8] sm:$0xff] }
  0x3a   :  { %113 = vmatpush1.msra.mxu0 %v78_v18  ;;  %398 = vmatprep.subr.mxu1 %v277_v42  ;;  %v256_v53 = vld [vmem:[#allocation7 + $0x40] sm:$0xff]  ;;  %v255_v55 = vld [vmem:[#allocation7 + $0x38] sm:$0xff]  ;;  %v270_v56 = vld [vmem:[#allocation7 + $0xb0] sm:$0xff] }
  0x3b   :  { %114 = vmatprep.subr.mxu0 %v77_v19  ;;  %399 = vmatpush3.msra.mxu1 %v261_v43  ;;  %v254_v57 = vld [vmem:[#allocation7 + $0x30] sm:$0xff]  ;;  %v269_v58 = vld [vmem:[#allocation7 + $0xa8] sm:$0xff]  ;;  %v268_v60 = vld [vmem:[#allocation7 + $0xa0] sm:$0xff] }
  0x3c   :  { %115 = vmatpush1.msra.mxu0 %v76_v20  ;;  %400 = vmatprep.subr.mxu1 %v276_v44  ;;  %v253_v59 = vld [vmem:[#allocation7 + $0x28] sm:$0xff]  ;;  %v252_v61 = vld [vmem:[#allocation7 + $0x20] sm:$0xff]  ;;  %v267_v62 = vld [vmem:[#allocation7 + $0x98] sm:$0xff] }
  0x3d   :  { %116 = vmatprep.subr.mxu0 %v75_v21  ;;  %401 = vmatpush3.msra.mxu1 %v260_v45  ;;  %v251_v63 = vld [vmem:[#allocation7 + $0x18] sm:$0xff]  ;;  %v250_v1 = vld [vmem:[#allocation7 + $0x10] sm:$0xff]  ;;  %v265_v2 = vld [vmem:[#allocation7 + $0x88] sm:$0xff] }
  0x3e   :  { %117 = vmatpush1.msra.mxu0 %v74_v22  ;;  %402 = vmatprep.subr.mxu1 %v275_v46  ;;  %v249_v3 = vld [vmem:[#allocation7 + $0x8] sm:$0xff]  ;;  %v264_v4 = vld [vmem:[#allocation7 + $0x80] sm:$0xff] }
  0x3f   :  { %118 = vmatprep.subr.mxu0 %v73_v23  ;;  %403 = vmatpush3.msra.mxu1 %v259_v47  ;;  %v248_v5 = vld [vmem:[#allocation7] sm:$0xff] }
  0x40   :  { %119 = vmatpush1.msra.mxu0 %v72_v24  ;;  %404 = vmatprep.subr.mxu1 %v274_v48 }
  0x41   :  { %120 = vmatprep.subr.mxu0 %v71_v25  ;;  %405 = vmatpush3.msra.mxu1 %v258_v49 }
  0x42   :  { %121 = vmatpush1.msra.mxu0 %v70_v26  ;;  %406 = vmatprep.subr.mxu1 %v273_v50 }
  0x43   :  { %122 = vmatprep.subr.mxu0 %v69_v27  ;;  %407 = vmatpush3.msra.mxu1 %v257_v51 }
  0x44   :  { %123 = vmatpush1.msra.mxu0 %v68_v28  ;;  %408 = vmatprep.subr.mxu1 %v272_v52 }
  0x45   :  { %124 = vmatprep.subr.mxu0 %v67_v29  ;;  %409 = vmatpush3.msra.mxu1 %v256_v53 }
  0x46   :  { %125 = vmatpush1.msra.mxu0 %v66_v30  ;;  %410 = vmatprep.subr.mxu1 %v271_v54 }
  0x47   :  { %126 = vmatprep.subr.mxu0 %v65_v31  ;;  %411 = vmatpush3.msra.mxu1 %v255_v55 }
  0x48   :  { %127 = vmatpush1.msra.mxu0 %v64_v32  ;;  %412 = vmatprep.subr.mxu1 %v270_v56 }
  0x49   :  { %161 = vmatmul.mubr.f32.vlgmr.msra.gmra.mxu0 %v59_v33  ;;  %413 = vmatpush3.msra.mxu1 %v254_v57 }
  0x4a   :  { %166 = vmatprep.mubr.f32.mxu0 %v553_v0  ;;  %414 = vmatprep.subr.mxu1 %v269_v58 }
  0x4b   :  { %415 = vmatpush3.msra.mxu1 %v253_v59 }
  0x4c   :  { %416 = vmatprep.subr.mxu1 %v268_v60 }
  0x4d   :  { %167 = vmatmul.mubr.f32.gmra.mxu0 %v60_v34  ;;  %417 = vmatpush3.msra.mxu1 %v252_v61  ;;  %v393_v34 = vld [vmem:[%s612_s3] ss:$0 sm:$0xff]  ;;  %s554_s3 = smov [#allocation8]  }
  0x4e   :  { %172 = vmatprep.mubr.f32.mxu0 %v553_v0  ;;  %418 = vmatprep.subr.mxu1 %v267_v62  ;;  %s380_s7 = sshll.u32 %s554_s3, 4  ;;  %s381_s7 = int_to_ptr.vmem [resolvable:$true] %s380_s7 }
  0x4f   :  { %419 = vmatpush3.msra.mxu1 %v251_v63  ;;  %s520_s8 = scalar_lea.vmem %s381_s7, 640  ;;  %p525_p2 = scmp.lt.s32.totalorder %s381_s7, %s381_s7 }
  0x50   :  { %p521_p1 = scmp.ne.s32.totalorder %s381_s7, %s520_s8  ;;  %p526_p3 = scmp.lt.s32.totalorder %s520_s8, %s520_s8 }
  0x51   :  { %173 = vmatmul.mubr.f32.gmra.mxu0 %v61_v35 }
  0x52   :  { %178 = vmatprep.mubr.f32.mxu0 %v553_v0  ;;  %p527_p4 = por %p526_p3, %p525_p2 }
  0x54   :  { %p528_p5 = pnand %p527_p4, %p521_p1 }
  0x55   :  { %179 = vmatmul.mubr.f32.gmra.mxu0 %v62_v36 }
  0x56   :  { %184 = vmatprep.mubr.f32.mxu0 %v553_v0  ;;  %v266_v0 = vld [vmem:[#allocation7 + $0x90] sm:$0xff] }
  0x57   :  { %420 = vmatprep.subr.mxu1 %v266_v0 }
  0x58   :  { %421 = vmatpush3.msra.mxu1 %v250_v1 }
  0x59   :  { %185 = vmatmul.mubr.f32.gmra.mxu0 %v63_v37  ;;  %422 = vmatprep.subr.mxu1 %v265_v2 }
  0x5a   :  { %423 = vmatpush3.msra.mxu1 %v249_v3 }
  0x5b   :  { %424 = vmatprep.subr.mxu1 %v264_v4 }
  0x5c   :  { %425 = vmatpush3.msra.mxu1 %v248_v5 }
 0x109   :  { %v162_v6 = vpop.f32.mrf.mxu0 }
 0x10a   :  { %v191_v8 = vmul.f32 %v162_v6, %v162_v6 }
 0x10b   :  { %v164_v7 = vpop.f32.mrf.mxu0 }
 0x10c   :  { %v196_v9 = vmul.f32 %v164_v7, %v164_v7 }
 0x10d   :  { %v168_v10 = vpop.f32.mrf.mxu0 }
 0x10e   :  { %v201_v11 = vadd.f32 %v196_v9, %v191_v8  ;;  %v192_v14 = vmul.f32 %v168_v10, %v168_v10 }
 0x10f   :  { %v170_v12 = vpop.f32.mrf.mxu0 }
 0x110   :  { %v206_v13 = vadd.f32 1.1754944e-38, %v201_v11  ;;  %v197_v15 = vmul.f32 %v170_v12, %v170_v12 }
 0x111   :  { %v174_v16 = vpop.f32.mrf.mxu0 }
 0x112   :  { %450 = vrsqrt.f32 %v206_v13  ;;  %v202_v17 = vadd.f32 %v197_v15, %v192_v14  ;;  %v193_v20 = vmul.f32 %v174_v16, %v174_v16 }
 0x113   :  { %v176_v18 = vpop.f32.mrf.mxu0 }
 0x114   :  { %v207_v19 = vadd.f32 1.1754944e-38, %v202_v17  ;;  %v198_v21 = vmul.f32 %v176_v18, %v176_v18 }
 0x115   :  { %v180_v22 = vpop.f32.mrf.mxu0 }
 0x116   :  { %452 = vrsqrt.f32 %v207_v19  ;;  %v203_v23 = vadd.f32 %v198_v21, %v193_v20  ;;  %v194_v26 = vmul.f32 %v180_v22, %v180_v22 }
 0x117   :  { %v182_v24 = vpop.f32.mrf.mxu0 }
 0x118   :  { %v208_v25 = vadd.f32 1.1754944e-38, %v203_v23  ;;  %v199_v27 = vmul.f32 %v182_v24, %v182_v24 }
 0x119   :  { %v186_v28 = vpop.f32.mrf.mxu0 }
 0x11a   :  { %454 = vrsqrt.f32 %v208_v25  ;;  %v204_v29 = vadd.f32 %v199_v27, %v194_v26  ;;  %v195_v32 = vmul.f32 %v186_v28, %v186_v28 }
 0x11b   :  { %v188_v30 = vpop.f32.mrf.mxu0 }
 0x11c   :  { %v209_v31 = vadd.f32 1.1754944e-38, %v204_v29  ;;  %v200_v33 = vmul.f32 %v188_v30, %v188_v30 }
 0x11e   :  { %456 = vrsqrt.f32 %v209_v31  ;;  %v205_v35 = vadd.f32 %v200_v33, %v195_v32 }
 0x11f   :  { %v451_v36 = vpop.eup %450 }
 0x120   :  { %v210_v37 = vadd.f32 1.1754944e-38, %v205_v35  ;;  %v223_v38 = vmul.f32 %v451_v36, %v393_v34 }
 0x122   :  { %458 = vrsqrt.f32 %v210_v37  ;;  %v228_v39 = vsub.f32 1.0, %v223_v38 }
 0x123   :  { %v453_v40 = vpop.eup %452 }
 0x124   :  { %v224_v41 = vmul.f32 %v453_v40, %v393_v34  ;;  %v233_v42 = vmax.f32 %v228_v39, 0.0 }
 0x126   :  { %v229_v43 = vsub.f32 1.0, %v224_v41  ;;  %v239_v44 = vmul.f32 %v233_v42, %v164_v7  ;;  %v238_v45 = vmul.f32 %v233_v42, %v162_v6 }
 0x127   :  { %v455_v46 = vpop.eup %454 }
 0x128   :  { %v234_v47 = vmax.f32 %v229_v43, 0.0  ;;  %v225_v48 = vmul.f32 %v455_v46, %v393_v34  ;;  %344 = vmatprep.mubr.f32.mxu1 %v239_v44 }
 0x129   :  { %345 = vmatmul.mubr.f32.vlgmr.msra.gmra.mxu1 %v238_v45 }
 0x12a   :  { %v241_v49 = vmul.f32 %v234_v47, %v170_v12  ;;  %v230_v50 = vsub.f32 1.0, %v225_v48  ;;  %v240_v51 = vmul.f32 %v234_v47, %v168_v10 }
 0x12b   :  { %v457_v52 = vpop.eup %456 }
 0x12c   :  { %v235_v53 = vmax.f32 %v230_v50, 0.0  ;;  %v226_v54 = vmul.f32 %v457_v52, %v393_v34  ;;  %349 = vmatprep.mubr.f32.mxu1 %v241_v49 }
 0x12d   :  { %350 = vmatmul.mubr.f32.gmra.mxu1 %v240_v51 }
 0x12e   :  { %v243_v55 = vmul.f32 %v235_v53, %v176_v18  ;;  %v231_v56 = vsub.f32 1.0, %v226_v54  ;;  %v242_v57 = vmul.f32 %v235_v53, %v174_v16 }
 0x12f   :  { %v459_v58 = vpop.eup %458 }
 0x130   :  { %v236_v59 = vmax.f32 %v231_v56, 0.0  ;;  %v227_v60 = vmul.f32 %v459_v58, %v393_v34  ;;  %354 = vmatprep.mubr.f32.mxu1 %v243_v55 }
 0x131   :  { %355 = vmatmul.mubr.f32.gmra.mxu1 %v242_v57 }
 0x132   :  { %v245_v61 = vmul.f32 %v236_v59, %v182_v24  ;;  %v232_v62 = vsub.f32 1.0, %v227_v60  ;;  %v244_v63 = vmul.f32 %v236_v59, %v180_v22 }
 0x134   :  { %v237_v0 = vmax.f32 %v232_v62, 0.0  ;;  %359 = vmatprep.mubr.f32.mxu1 %v245_v61 }
 0x135   :  { %360 = vmatmul.mubr.f32.gmra.mxu1 %v244_v63 }
 0x136   :  { %v247_v1 = vmul.f32 %v237_v0, %v188_v30  ;;  %v246_v2 = vmul.f32 %v237_v0, %v186_v28 }
 0x138   :  { %364 = vmatprep.mubr.f32.mxu1 %v247_v1 }
 0x139   :  { %365 = vmatmul.mubr.f32.gmra.mxu1 %v246_v2 }
 0x1e9   :  { %v426_v3 = vpop.f32.mrf.mxu1 }
 0x1eb   :  { %v427_v4 = vpop.f32.mrf.mxu1 }
 0x1ec   :  { %v428_v5 = vadd.f32 %v427_v4, %v426_v3 }
 0x1ed   :  { %v429_v6 = vpop.f32.mrf.mxu1 }
 0x1ee   :  { %370 = vst [vmem:[#allocation8] sm:$0xff] %v428_v5 }
 0x1ef   :  { %v430_v7 = vpop.f32.mrf.mxu1 }
 0x1f0   :  { %v431_v8 = vadd.f32 %v430_v7, %v429_v6 }
 0x1f1   :  { %v432_v9 = vpop.f32.mrf.mxu1 }
 0x1f2   :  { %371 = vst [vmem:[#allocation8 + $0x8] sm:$0xff] %v431_v8 }
 0x1f3   :  { %v433_v10 = vpop.f32.mrf.mxu1 }
 0x1f4   :  { %v434_v11 = vadd.f32 %v433_v10, %v432_v9 }
 0x1f5   :  { %v435_v12 = vpop.f32.mrf.mxu1 }
 0x1f6   :  { %372 = vst [vmem:[#allocation8 + $0x10] sm:$0xff] %v434_v11 }
 0x1f7   :  { %v436_v13 = vpop.f32.mrf.mxu1 }
 0x1f8   :  { %v437_v14 = vadd.f32 %v436_v13, %v435_v12 }
 0x1f9   :  { %v438_v15 = vpop.f32.mrf.mxu1 }
 0x1fa   :  { %373 = vst [vmem:[#allocation8 + $0x18] sm:$0xff] %v437_v14 }
 0x1fb   :  { %v439_v16 = vpop.f32.mrf.mxu1 }
 0x1fc   :  { %v440_v17 = vadd.f32 %v439_v16, %v438_v15 }
 0x1fe   :  { %374 = vst [vmem:[#allocation8 + $0x20] sm:$0xff] %v440_v17 }
 0x1ff   :  { %531 = shalt.err (!%p528_p5)
}
 0x200   :  { %386 = dma.vmem_to_hbm [thread:$0]  %s381_s7, 640, %s613_s4, [#allocation4], %s550_s25, %s550_s25, %s551_s26  }
 0x201   :  { %544 = dma.done.wait [#allocation4], 640  }
 0x202   :  { %545 = vsyncadd [#allocation4], 4294966656 }
 0x203   :  { %390 = vsyncpa [#allocation3], 1 }
 0x204   :  { %391 = vsyncpa [#allocation6], 1 }
 0x205   :  { %392 = vsyncpa [#allocation4], 1 }

</bundles_post_ra>
